<compile_context>
chip_gen: v5e
topology: v5e:2x2
jax: 0.10.0
libtpu: 0.0.40
codegen_flags: <defaults>
</compile_context>

<pallas_src>
import functools
import math

import jax
import jax.numpy as jnp
import numpy as np
from jax.experimental import pallas as pl
from jax.experimental.pallas import tpu as pltpu


# ----------------------------------------------------------------------------
# Kernel
# ----------------------------------------------------------------------------
def gru_net_kernel(
    x_ref,        # (T*B, D)   time-major flattened input (row = t*B + b)
    wenc_ref,     # (D, F)
    benc_ref,     # (1, F)
    wi_ref,       # (F, 3H)    [r | z | n] fused input-side gate weights
    bi_ref,       # (1, 3H)    [bir+bhr | biz+bhz | bin]  (r/z hidden biases folded)
    wh_ref,       # (H, 3H)    [r | z | n] fused hidden-side gate weights
    bhn_ref,      # (1, H)
    wdec_ref,     # (H, NIp)   lane-padded decoder weight
    bdec_ref,     # (1, NIp)
    y_ref,        # (T*B, NIp) lane-dense output logits
    gi_ref,       # scratch (T*B, 3H): precomputed input-side gates
    hs_ref,       # scratch (T*B, H):  per-step hidden states
    *,
    seq_len,
    batch,
):
    H = wh_ref.shape[0]
    B = batch

    # ---- encoder: Linear + ReLU on flattened (neurons*time) features -------
    feat = jnp.maximum(
        jnp.dot(x_ref[...], wenc_ref[...], preferred_element_type=jnp.float32)
        + benc_ref[...],
        0.0,
    )                                                              # (T*B, F)

    # ---- fused input-side gate projections for all timesteps ----------------
    # (b_hr / b_hz already folded into bi; only b_hn must stay inside the loop
    #  because of the r * (h @ Whn + b_hn) term.)
    gi_ref[...] = (
        jnp.dot(feat, wi_ref[...], preferred_element_type=jnp.float32)
        + bi_ref[...]
    )                                                              # (T*B, 3H)

    bhn = bhn_ref[...]                                             # (1, H)

    # ---- t = 0: h0 == 0, so the hidden-side matmul is a no-op ---------------
    g0 = gi_ref[pl.ds(0, B), :]                                    # (B, 3H)
    rz0 = jax.nn.sigmoid(g0[:, : 2 * H])
    r0 = rz0[:, :H]
    z0 = rz0[:, H:]
    n0 = jnp.tanh(g0[:, 2 * H:] + r0 * bhn)
    h = (1.0 - z0) * n0
    hs_ref[pl.ds(0, B), :] = h

    # ---- remaining recurrence, fully unrolled (seq_len is static) -----------
    # One fused (B,H)@(H,3H) matmul per step (3H=60 fits a single 128-lane tile).
    for t in range(1, seq_len):
        g = gi_ref[pl.ds(t * B, B), :]                             # (B, 3H)
        gh = jnp.dot(h, wh_ref[...], preferred_element_type=jnp.float32)
        rz = jax.nn.sigmoid(g[:, : 2 * H] + gh[:, : 2 * H])
        r = rz[:, :H]
        z = rz[:, H:]
        n = jnp.tanh(g[:, 2 * H:] + r * (gh[:, 2 * H:] + bhn))
        h = (1.0 - z) * n + z * h
        hs_ref[pl.ds(t * B, B), :] = h

    # ---- decoder: one batched Linear over every hidden state ----------------
    y_ref[...] = (
        jnp.dot(hs_ref[...], wdec_ref[...], preferred_element_type=jnp.float32)
        + bdec_ref[...]
    )


# ----------------------------------------------------------------------------
# Wrapper: fuse/fold params, flatten to time-major 2D, call kernel, undo.
# ----------------------------------------------------------------------------
def gru_forward(x, params):
    B, T, N, TS = x.shape
    D = N * TS
    F = params["wenc"].shape[1]
    H = params["whr"].shape[0]
    NI = params["wdec"].shape[1]
    NIp = ((NI + 127) // 128) * 128          # lane-dense decoder output width

    # Parameter fusion / bias folding (cheap; const-folded under jit).
    wi = jnp.concatenate([params["wir"], params["wiz"], params["win"]], axis=1)
    bi = jnp.concatenate(
        [params["bir"] + params["bhr"],
         params["biz"] + params["bhz"],
         params["bin"]], axis=1)
    wh = jnp.concatenate([params["whr"], params["whz"], params["whn"]], axis=1)
    wdec = jnp.pad(params["wdec"], ((0, 0), (0, NIp - NI)))
    bdec = jnp.pad(params["bdec"], ((0, 0), (0, NIp - NI)))

    # Time-major, sublane-dense 2D input: row index = t*B + b.
    x_tm = jnp.transpose(x.reshape(B, T, D), (1, 0, 2)).reshape(T * B, D)

    vmem = pl.BlockSpec(memory_space=pltpu.MemorySpace.VMEM)
    flops = 2 * T * B * (D * F + F * 3 * H + H * 3 * H + H * NIp)
    bytes_accessed = 4 * (
        T * B * (D + NIp)                                  # input + output
        + D * F + F * 3 * H + H * 3 * H + H * NIp          # weights
        + F + 3 * H + H + NIp                              # biases
    )

    y_flat = pl.pallas_call(
        functools.partial(gru_net_kernel, seq_len=T, batch=B),
        out_shape=jax.ShapeDtypeStruct((T * B, NIp), jnp.float32),
        in_specs=[vmem] * 9,
        out_specs=vmem,
        scratch_shapes=[
            pltpu.VMEM((T * B, 3 * H), jnp.float32),
            pltpu.VMEM((T * B, H), jnp.float32),
        ],
        compiler_params=pltpu.CompilerParams(
            vmem_limit_bytes=32 * 1024 * 1024),
        cost_estimate=pl.CostEstimate(
            flops=flops,
            transcendentals=3 * T * B * H,
            bytes_accessed=bytes_accessed),
    )(x_tm, params["wenc"], params["benc"], wi, bi, wh, params["bhn"],
      wdec, bdec)

    y = y_flat[:, :NI].reshape(T, B, NI)
    return jnp.transpose(y, (1, 0, 2))       # back to (B, T, NI), batch-first


# ----------------------------------------------------------------------------
# Pure-JAX reference (mirrors the PyTorch forward exactly) for validation.
# ----------------------------------------------------------------------------
def reference_forward(x, params):
    B, T, N, TS = x.shape
    xf = x.reshape(B, T, N * TS)
    feat = jax.nn.relu(xf @ params["wenc"] + params["benc"])       # (B, T, F)
    H = params["whr"].shape[0]

    def step(h, x_t):
        r = jax.nn.sigmoid(x_t @ params["wir"] + params["bir"]
                           + h @ params["whr"] + params["bhr"])
        z = jax.nn.sigmoid(x_t @ params["wiz"] + params["biz"]
                           + h @ params["whz"] + params["bhz"])
        n = jnp.tanh(x_t @ params["win"] + params["bin"]
                     + r * (h @ params["whn"] + params["bhn"]))
        h_new = (1.0 - z) * n + z * h
        return h_new, h_new

    h0 = jnp.zeros((B, H), jnp.float32)
    _, hs = jax.lax.scan(step, h0, jnp.swapaxes(feat, 0, 1))       # (T, B, H)
    hs = jnp.swapaxes(hs, 0, 1)                                    # (B, T, H)
    return hs @ params["wdec"] + params["bdec"]                    # (B, T, NI)


# ----------------------------------------------------------------------------
# Deterministic parameter init (PyTorch-default-style uniform bounds).
# ----------------------------------------------------------------------------
def init_params(key, D, F, H, NI):
    ks = jax.random.split(key, 16)

    def u(k, shape, bound):
        return jax.random.uniform(k, shape, jnp.float32, -bound, bound)

    be = 1.0 / math.sqrt(D)   # encoder Linear bound
    bg = 1.0 / math.sqrt(H)   # GRU bound
    bd = 1.0 / math.sqrt(H)   # decoder Linear bound
    return {
        "wenc": u(ks[0], (D, F), be), "benc": u(ks[1], (1, F), be),
        "wir": u(ks[2], (F, H), bg), "wiz": u(ks[3], (F, H), bg), "win": u(ks[4], (F, H), bg),
        "whr": u(ks[5], (H, H), bg), "whz": u(ks[6], (H, H), bg), "whn": u(ks[7], (H, H), bg),
        "bir": u(ks[8], (1, H), bg), "biz": u(ks[9], (1, H), bg), "bin": u(ks[10], (1, H), bg),
        "bhr": u(ks[11], (1, H), bg), "bhz": u(ks[12], (1, H), bg), "bhn": u(ks[13], (1, H), bg),
        "wdec": u(ks[14], (H, NI), bd), "bdec": u(ks[15], (1, NI), bd),
    }


if __name__ == "__main__":
    # input_batch: (n_batches, n_trials=seq_len, n_neurons, n_timestamps)
    B, T, N, TS = 2, 8, 4, 16
    F, H, NI = 69, 20, 8 + 1   # x_feat_length, gru_hidden_size, n_images

    key = jax.random.PRNGKey(0)
    kx, kp = jax.random.split(key)
    x = jax.random.normal(kx, (B, T, N, TS), jnp.float32)
    params = init_params(kp, N * TS, F, H, NI)

    y = gru_forward(x, params)
    y = jax.block_until_ready(y)

    y_ref = reference_forward(x, params)
    assert y.shape == (B, T, NI), y.shape
    np.testing.assert_allclose(np.asarray(y), np.asarray(y_ref), rtol=2e-3, atol=2e-3)

    print("KERNEL_OK")
</pallas_src>

<mosaic_0001>
module attributes {stable_mosaic.version = 11 : i64} {
  func.func @gru_net_kernel(%arg0: memref<16x64xf32, #tpu.memory_space<vmem>>, %arg1: memref<64x69xf32, #tpu.memory_space<vmem>>, %arg2: memref<1x69xf32, #tpu.memory_space<vmem>>, %arg3: memref<69x60xf32, #tpu.memory_space<vmem>>, %arg4: memref<1x60xf32, #tpu.memory_space<vmem>>, %arg5: memref<20x60xf32, #tpu.memory_space<vmem>>, %arg6: memref<1x20xf32, #tpu.memory_space<vmem>>, %arg7: memref<20x128xf32, #tpu.memory_space<vmem>>, %arg8: memref<1x128xf32, #tpu.memory_space<vmem>>, %arg9: memref<16x128xf32, #tpu.memory_space<vmem>>, %arg10: memref<16x60xf32, #tpu.memory_space<vmem>>, %arg11: memref<16x20xf32, #tpu.memory_space<vmem>>) attributes {dimension_semantics = [], scalar_prefetch = 0 : i64, scratch_operands = 2 : i64, tpu.core_type = #tpu.core_type<tc>} {
    %c0 = arith.constant 0 : index
    %c0_0 = arith.constant 0 : index
    %0 = vector.load %arg0[%c0, %c0_0] : memref<16x64xf32, #tpu.memory_space<vmem>>, vector<16x64xf32>
    %c0_1 = arith.constant 0 : index
    %c0_2 = arith.constant 0 : index
    %1 = vector.load %arg1[%c0_1, %c0_2] : memref<64x69xf32, #tpu.memory_space<vmem>>, vector<64x69xf32>
    %cst = arith.constant dense<0.000000e+00> : vector<16x69xf32>
    %2 = tpu.matmul %0, %1, %cst {dimension_numbers = #tpu.dot_dimension_numbers<[1], [0], [0], [1], [0, 0, 1, 1], [], []>} : vector<16x64xf32>, vector<64x69xf32>, vector<16x69xf32> -> vector<16x69xf32>
    %c0_3 = arith.constant 0 : index
    %c0_4 = arith.constant 0 : index
    %3 = vector.load %arg2[%c0_3, %c0_4] : memref<1x69xf32, #tpu.memory_space<vmem>>, vector<1x69xf32>
    %4 = vector.broadcast %3 : vector<1x69xf32> to vector<16x69xf32>
    %5 = arith.addf %2, %4 : vector<16x69xf32>
    %cst_5 = arith.constant 0.000000e+00 : f32
    %6 = vector.broadcast %cst_5 : f32 to vector<16x69xf32>
    %7 = arith.maximumf %5, %6 : vector<16x69xf32>
    %c0_6 = arith.constant 0 : index
    %c0_7 = arith.constant 0 : index
    %8 = vector.load %arg3[%c0_6, %c0_7] : memref<69x60xf32, #tpu.memory_space<vmem>>, vector<69x60xf32>
    %cst_8 = arith.constant dense<0.000000e+00> : vector<16x60xf32>
    %9 = tpu.matmul %7, %8, %cst_8 {dimension_numbers = #tpu.dot_dimension_numbers<[1], [0], [0], [1], [0, 0, 1, 1], [], []>} : vector<16x69xf32>, vector<69x60xf32>, vector<16x60xf32> -> vector<16x60xf32>
    %c0_9 = arith.constant 0 : index
    %c0_10 = arith.constant 0 : index
    %10 = vector.load %arg4[%c0_9, %c0_10] : memref<1x60xf32, #tpu.memory_space<vmem>>, vector<1x60xf32>
    %11 = vector.broadcast %10 : vector<1x60xf32> to vector<16x60xf32>
    %12 = arith.addf %9, %11 : vector<16x60xf32>
    %c0_11 = arith.constant 0 : index
    %c0_12 = arith.constant 0 : index
    %13 = vector.load %arg10[%c0_11, %c0_12] : memref<16x60xf32, #tpu.memory_space<vmem>>, vector<16x60xf32>
    tpu.vector_store %arg10[%c0_11, %c0_12], %12 {strides = array<i32>} : memref<16x60xf32, #tpu.memory_space<vmem>>, vector<16x60xf32>,
    %c0_13 = arith.constant 0 : index
    %c0_14 = arith.constant 0 : index
    %14 = vector.load %arg6[%c0_13, %c0_14] : memref<1x20xf32, #tpu.memory_space<vmem>>, vector<1x20xf32>
    %c0_15 = arith.constant 0 : index
    %c0_16 = arith.constant 0 : index
    %15 = vector.load %arg10[%c0_15, %c0_16] : memref<16x60xf32, #tpu.memory_space<vmem>>, vector<2x60xf32>
    %16 = vector.extract_strided_slice %15 {offsets = [0, 0], sizes = [2, 40], strides = [1, 1]} : vector<2x60xf32> to vector<2x40xf32>
    %17 = arith.negf %16 : vector<2x40xf32>
    %18 = math.exp %17 : vector<2x40xf32>
    %cst_17 = arith.constant 1.000000e+00 : f32
    %19 = vector.broadcast %cst_17 : f32 to vector<2x40xf32>
    %20 = arith.addf %19, %18 : vector<2x40xf32>
    %21 = arith.divf %19, %20 : vector<2x40xf32>
    %22 = vector.extract_strided_slice %21 {offsets = [0, 0], sizes = [2, 20], strides = [1, 1]} : vector<2x40xf32> to vector<2x20xf32>
    %23 = vector.extract_strided_slice %21 {offsets = [0, 20], sizes = [2, 20], strides = [1, 1]} : vector<2x40xf32> to vector<2x20xf32>
    %24 = vector.extract_strided_slice %15 {offsets = [0, 40], sizes = [2, 20], strides = [1, 1]} : vector<2x60xf32> to vector<2x20xf32>
    %25 = vector.broadcast %14 : vector<1x20xf32> to vector<2x20xf32>
    %26 = arith.mulf %22, %25 : vector<2x20xf32>
    %27 = arith.addf %24, %26 : vector<2x20xf32>
    %28 = math.tanh %27 : vector<2x20xf32>
    %cst_18 = arith.constant 1.000000e+00 : f32
    %29 = vector.broadcast %cst_18 : f32 to vector<2x20xf32>
    %30 = arith.subf %29, %23 : vector<2x20xf32>
    %31 = arith.mulf %30, %28 : vector<2x20xf32>
    %c0_19 = arith.constant 0 : index
    %c0_20 = arith.constant 0 : index
    %32 = vector.load %arg11[%c0_19, %c0_20] : memref<16x20xf32, #tpu.memory_space<vmem>>, vector<2x20xf32>
    tpu.vector_store %arg11[%c0_19, %c0_20], %31 {strides = array<i32>} : memref<16x20xf32, #tpu.memory_space<vmem>>, vector<2x20xf32>,
    %c2 = arith.constant 2 : index
    %c0_21 = arith.constant 0 : index
    %33 = vector.load %arg10[%c2, %c0_21] : memref<16x60xf32, #tpu.memory_space<vmem>>, vector<2x60xf32>
    %c0_22 = arith.constant 0 : index
    %c0_23 = arith.constant 0 : index
    %34 = vector.load %arg5[%c0_22, %c0_23] : memref<20x60xf32, #tpu.memory_space<vmem>>, vector<20x60xf32>
    %cst_24 = arith.constant dense<0.000000e+00> : vector<2x60xf32>
    %35 = tpu.matmul %31, %34, %cst_24 {dimension_numbers = #tpu.dot_dimension_numbers<[1], [0], [0], [1], [0, 0, 1, 1], [], []>} : vector<2x20xf32>, vector<20x60xf32>, vector<2x60xf32> -> vector<2x60xf32>
    %36 = vector.extract_strided_slice %33 {offsets = [0, 0], sizes = [2, 40], strides = [1, 1]} : vector<2x60xf32> to vector<2x40xf32>
    %37 = vector.extract_strided_slice %35 {offsets = [0, 0], sizes = [2, 40], strides = [1, 1]} : vector<2x60xf32> to vector<2x40xf32>
    %38 = arith.addf %36, %37 : vector<2x40xf32>
    %39 = arith.negf %38 : vector<2x40xf32>
    %40 = math.exp %39 : vector<2x40xf32>
    %cst_25 = arith.constant 1.000000e+00 : f32
    %41 = vector.broadcast %cst_25 : f32 to vector<2x40xf32>
    %42 = arith.addf %41, %40 : vector<2x40xf32>
    %43 = arith.divf %41, %42 : vector<2x40xf32>
    %44 = vector.extract_strided_slice %43 {offsets = [0, 0], sizes = [2, 20], strides = [1, 1]} : vector<2x40xf32> to vector<2x20xf32>
    %45 = vector.extract_strided_slice %43 {offsets = [0, 20], sizes = [2, 20], strides = [1, 1]} : vector<2x40xf32> to vector<2x20xf32>
    %46 = vector.extract_strided_slice %33 {offsets = [0, 40], sizes = [2, 20], strides = [1, 1]} : vector<2x60xf32> to vector<2x20xf32>
    %47 = vector.extract_strided_slice %35 {offsets = [0, 40], sizes = [2, 20], strides = [1, 1]} : vector<2x60xf32> to vector<2x20xf32>
    %48 = vector.broadcast %14 : vector<1x20xf32> to vector<2x20xf32>
    %49 = arith.addf %47, %48 : vector<2x20xf32>
    %50 = arith.mulf %44, %49 : vector<2x20xf32>
    %51 = arith.addf %46, %50 : vector<2x20xf32>
    %52 = math.tanh %51 : vector<2x20xf32>
    %cst_26 = arith.constant 1.000000e+00 : f32
    %53 = vector.broadcast %cst_26 : f32 to vector<2x20xf32>
    %54 = arith.subf %53, %45 : vector<2x20xf32>
    %55 = arith.mulf %54, %52 : vector<2x20xf32>
    %56 = arith.mulf %45, %31 : vector<2x20xf32>
    %57 = arith.addf %55, %56 : vector<2x20xf32>
    %c2_27 = arith.constant 2 : index
    %c0_28 = arith.constant 0 : index
    %58 = vector.load %arg11[%c2_27, %c0_28] : memref<16x20xf32, #tpu.memory_space<vmem>>, vector<2x20xf32>
    tpu.vector_store %arg11[%c2_27, %c0_28], %57 {strides = array<i32>} : memref<16x20xf32, #tpu.memory_space<vmem>>, vector<2x20xf32>,
    %c4 = arith.constant 4 : index
    %c0_29 = arith.constant 0 : index
    %59 = vector.load %arg10[%c4, %c0_29] : memref<16x60xf32, #tpu.memory_space<vmem>>, vector<2x60xf32>
    %c0_30 = arith.constant 0 : index
    %c0_31 = arith.constant 0 : index
    %60 = vector.load %arg5[%c0_30, %c0_31] : memref<20x60xf32, #tpu.memory_space<vmem>>, vector<20x60xf32>
    %cst_32 = arith.constant dense<0.000000e+00> : vector<2x60xf32>
    %61 = tpu.matmul %57, %60, %cst_32 {dimension_numbers = #tpu.dot_dimension_numbers<[1], [0], [0], [1], [0, 0, 1, 1], [], []>} : vector<2x20xf32>, vector<20x60xf32>, vector<2x60xf32> -> vector<2x60xf32>
    %62 = vector.extract_strided_slice %59 {offsets = [0, 0], sizes = [2, 40], strides = [1, 1]} : vector<2x60xf32> to vector<2x40xf32>
    %63 = vector.extract_strided_slice %61 {offsets = [0, 0], sizes = [2, 40], strides = [1, 1]} : vector<2x60xf32> to vector<2x40xf32>
    %64 = arith.addf %62, %63 : vector<2x40xf32>
    %65 = arith.negf %64 : vector<2x40xf32>
    %66 = math.exp %65 : vector<2x40xf32>
    %cst_33 = arith.constant 1.000000e+00 : f32
    %67 = vector.broadcast %cst_33 : f32 to vector<2x40xf32>
    %68 = arith.addf %67, %66 : vector<2x40xf32>
    %69 = arith.divf %67, %68 : vector<2x40xf32>
    %70 = vector.extract_strided_slice %69 {offsets = [0, 0], sizes = [2, 20], strides = [1, 1]} : vector<2x40xf32> to vector<2x20xf32>
    %71 = vector.extract_strided_slice %69 {offsets = [0, 20], sizes = [2, 20], strides = [1, 1]} : vector<2x40xf32> to vector<2x20xf32>
    %72 = vector.extract_strided_slice %59 {offsets = [0, 40], sizes = [2, 20], strides = [1, 1]} : vector<2x60xf32> to vector<2x20xf32>
    %73 = vector.extract_strided_slice %61 {offsets = [0, 40], sizes = [2, 20], strides = [1, 1]} : vector<2x60xf32> to vector<2x20xf32>
    %74 = vector.broadcast %14 : vector<1x20xf32> to vector<2x20xf32>
    %75 = arith.addf %73, %74 : vector<2x20xf32>
    %76 = arith.mulf %70, %75 : vector<2x20xf32>
    %77 = arith.addf %72, %76 : vector<2x20xf32>
    %78 = math.tanh %77 : vector<2x20xf32>
    %cst_34 = arith.constant 1.000000e+00 : f32
    %79 = vector.broadcast %cst_34 : f32 to vector<2x20xf32>
    %80 = arith.subf %79, %71 : vector<2x20xf32>
    %81 = arith.mulf %80, %78 : vector<2x20xf32>
    %82 = arith.mulf %71, %57 : vector<2x20xf32>
    %83 = arith.addf %81, %82 : vector<2x20xf32>
    %c4_35 = arith.constant 4 : index
    %c0_36 = arith.constant 0 : index
    %84 = vector.load %arg11[%c4_35, %c0_36] : memref<16x20xf32, #tpu.memory_space<vmem>>, vector<2x20xf32>
    tpu.vector_store %arg11[%c4_35, %c0_36], %83 {strides = array<i32>} : memref<16x20xf32, #tpu.memory_space<vmem>>, vector<2x20xf32>,
    %c6 = arith.constant 6 : index
    %c0_37 = arith.constant 0 : index
    %85 = vector.load %arg10[%c6, %c0_37] : memref<16x60xf32, #tpu.memory_space<vmem>>, vector<2x60xf32>
    %c0_38 = arith.constant 0 : index
    %c0_39 = arith.constant 0 : index
    %86 = vector.load %arg5[%c0_38, %c0_39] : memref<20x60xf32, #tpu.memory_space<vmem>>, vector<20x60xf32>
    %cst_40 = arith.constant dense<0.000000e+00> : vector<2x60xf32>
    %87 = tpu.matmul %83, %86, %cst_40 {dimension_numbers = #tpu.dot_dimension_numbers<[1], [0], [0], [1], [0, 0, 1, 1], [], []>} : vector<2x20xf32>, vector<20x60xf32>, vector<2x60xf32> -> vector<2x60xf32>
    %88 = vector.extract_strided_slice %85 {offsets = [0, 0], sizes = [2, 40], strides = [1, 1]} : vector<2x60xf32> to vector<2x40xf32>
    %89 = vector.extract_strided_slice %87 {offsets = [0, 0], sizes = [2, 40], strides = [1, 1]} : vector<2x60xf32> to vector<2x40xf32>
    %90 = arith.addf %88, %89 : vector<2x40xf32>
    %91 = arith.negf %90 : vector<2x40xf32>
    %92 = math.exp %91 : vector<2x40xf32>
    %cst_41 = arith.constant 1.000000e+00 : f32
    %93 = vector.broadcast %cst_41 : f32 to vector<2x40xf32>
    %94 = arith.addf %93, %92 : vector<2x40xf32>
    %95 = arith.divf %93, %94 : vector<2x40xf32>
    %96 = vector.extract_strided_slice %95 {offsets = [0, 0], sizes = [2, 20], strides = [1, 1]} : vector<2x40xf32> to vector<2x20xf32>
    %97 = vector.extract_strided_slice %95 {offsets = [0, 20], sizes = [2, 20], strides = [1, 1]} : vector<2x40xf32> to vector<2x20xf32>
    %98 = vector.extract_strided_slice %85 {offsets = [0, 40], sizes = [2, 20], strides = [1, 1]} : vector<2x60xf32> to vector<2x20xf32>
    %99 = vector.extract_strided_slice %87 {offsets = [0, 40], sizes = [2, 20], strides = [1, 1]} : vector<2x60xf32> to vector<2x20xf32>
    %100 = vector.broadcast %14 : vector<1x20xf32> to vector<2x20xf32>
    %101 = arith.addf %99, %100 : vector<2x20xf32>
    %102 = arith.mulf %96, %101 : vector<2x20xf32>
    %103 = arith.addf %98, %102 : vector<2x20xf32>
    %104 = math.tanh %103 : vector<2x20xf32>
    %cst_42 = arith.constant 1.000000e+00 : f32
    %105 = vector.broadcast %cst_42 : f32 to vector<2x20xf32>
    %106 = arith.subf %105, %97 : vector<2x20xf32>
    %107 = arith.mulf %106, %104 : vector<2x20xf32>
    %108 = arith.mulf %97, %83 : vector<2x20xf32>
    %109 = arith.addf %107, %108 : vector<2x20xf32>
    %c6_43 = arith.constant 6 : index
    %c0_44 = arith.constant 0 : index
    %110 = vector.load %arg11[%c6_43, %c0_44] : memref<16x20xf32, #tpu.memory_space<vmem>>, vector<2x20xf32>
    tpu.vector_store %arg11[%c6_43, %c0_44], %109 {strides = array<i32>} : memref<16x20xf32, #tpu.memory_space<vmem>>, vector<2x20xf32>,
    %c8 = arith.constant 8 : index
    %c0_45 = arith.constant 0 : index
    %111 = vector.load %arg10[%c8, %c0_45] : memref<16x60xf32, #tpu.memory_space<vmem>>, vector<2x60xf32>
    %c0_46 = arith.constant 0 : index
    %c0_47 = arith.constant 0 : index
    %112 = vector.load %arg5[%c0_46, %c0_47] : memref<20x60xf32, #tpu.memory_space<vmem>>, vector<20x60xf32>
    %cst_48 = arith.constant dense<0.000000e+00> : vector<2x60xf32>
    %113 = tpu.matmul %109, %112, %cst_48 {dimension_numbers = #tpu.dot_dimension_numbers<[1], [0], [0], [1], [0, 0, 1, 1], [], []>} : vector<2x20xf32>, vector<20x60xf32>, vector<2x60xf32> -> vector<2x60xf32>
    %114 = vector.extract_strided_slice %111 {offsets = [0, 0], sizes = [2, 40], strides = [1, 1]} : vector<2x60xf32> to vector<2x40xf32>
    %115 = vector.extract_strided_slice %113 {offsets = [0, 0], sizes = [2, 40], strides = [1, 1]} : vector<2x60xf32> to vector<2x40xf32>
    %116 = arith.addf %114, %115 : vector<2x40xf32>
    %117 = arith.negf %116 : vector<2x40xf32>
    %118 = math.exp %117 : vector<2x40xf32>
    %cst_49 = arith.constant 1.000000e+00 : f32
    %119 = vector.broadcast %cst_49 : f32 to vector<2x40xf32>
    %120 = arith.addf %119, %118 : vector<2x40xf32>
    %121 = arith.divf %119, %120 : vector<2x40xf32>
    %122 = vector.extract_strided_slice %121 {offsets = [0, 0], sizes = [2, 20], strides = [1, 1]} : vector<2x40xf32> to vector<2x20xf32>
    %123 = vector.extract_strided_slice %121 {offsets = [0, 20], sizes = [2, 20], strides = [1, 1]} : vector<2x40xf32> to vector<2x20xf32>
    %124 = vector.extract_strided_slice %111 {offsets = [0, 40], sizes = [2, 20], strides = [1, 1]} : vector<2x60xf32> to vector<2x20xf32>
    %125 = vector.extract_strided_slice %113 {offsets = [0, 40], sizes = [2, 20], strides = [1, 1]} : vector<2x60xf32> to vector<2x20xf32>
    %126 = vector.broadcast %14 : vector<1x20xf32> to vector<2x20xf32>
    %127 = arith.addf %125, %126 : vector<2x20xf32>
    %128 = arith.mulf %122, %127 : vector<2x20xf32>
    %129 = arith.addf %124, %128 : vector<2x20xf32>
    %130 = math.tanh %129 : vector<2x20xf32>
    %cst_50 = arith.constant 1.000000e+00 : f32
    %131 = vector.broadcast %cst_50 : f32 to vector<2x20xf32>
    %132 = arith.subf %131, %123 : vector<2x20xf32>
    %133 = arith.mulf %132, %130 : vector<2x20xf32>
    %134 = arith.mulf %123, %109 : vector<2x20xf32>
    %135 = arith.addf %133, %134 : vector<2x20xf32>
    %c8_51 = arith.constant 8 : index
    %c0_52 = arith.constant 0 : index
    %136 = vector.load %arg11[%c8_51, %c0_52] : memref<16x20xf32, #tpu.memory_space<vmem>>, vector<2x20xf32>
    tpu.vector_store %arg11[%c8_51, %c0_52], %135 {strides = array<i32>} : memref<16x20xf32, #tpu.memory_space<vmem>>, vector<2x20xf32>,
    %c10 = arith.constant 10 : index
    %c0_53 = arith.constant 0 : index
    %137 = vector.load %arg10[%c10, %c0_53] : memref<16x60xf32, #tpu.memory_space<vmem>>, vector<2x60xf32>
    %c0_54 = arith.constant 0 : index
    %c0_55 = arith.constant 0 : index
    %138 = vector.load %arg5[%c0_54, %c0_55] : memref<20x60xf32, #tpu.memory_space<vmem>>, vector<20x60xf32>
    %cst_56 = arith.constant dense<0.000000e+00> : vector<2x60xf32>
    %139 = tpu.matmul %135, %138, %cst_56 {dimension_numbers = #tpu.dot_dimension_numbers<[1], [0], [0], [1], [0, 0, 1, 1], [], []>} : vector<2x20xf32>, vector<20x60xf32>, vector<2x60xf32> -> vector<2x60xf32>
    %140 = vector.extract_strided_slice %137 {offsets = [0, 0], sizes = [2, 40], strides = [1, 1]} : vector<2x60xf32> to vector<2x40xf32>
    %141 = vector.extract_strided_slice %139 {offsets = [0, 0], sizes = [2, 40], strides = [1, 1]} : vector<2x60xf32> to vector<2x40xf32>
    %142 = arith.addf %140, %141 : vector<2x40xf32>
    %143 = arith.negf %142 : vector<2x40xf32>
    %144 = math.exp %143 : vector<2x40xf32>
    %cst_57 = arith.constant 1.000000e+00 : f32
    %145 = vector.broadcast %cst_57 : f32 to vector<2x40xf32>
    %146 = arith.addf %145, %144 : vector<2x40xf32>
    %147 = arith.divf %145, %146 : vector<2x40xf32>
    %148 = vector.extract_strided_slice %147 {offsets = [0, 0], sizes = [2, 20], strides = [1, 1]} : vector<2x40xf32> to vector<2x20xf32>
    %149 = vector.extract_strided_slice %147 {offsets = [0, 20], sizes = [2, 20], strides = [1, 1]} : vector<2x40xf32> to vector<2x20xf32>
    %150 = vector.extract_strided_slice %137 {offsets = [0, 40], sizes = [2, 20], strides = [1, 1]} : vector<2x60xf32> to vector<2x20xf32>
    %151 = vector.extract_strided_slice %139 {offsets = [0, 40], sizes = [2, 20], strides = [1, 1]} : vector<2x60xf32> to vector<2x20xf32>
    %152 = vector.broadcast %14 : vector<1x20xf32> to vector<2x20xf32>
    %153 = arith.addf %151, %152 : vector<2x20xf32>
    %154 = arith.mulf %148, %153 : vector<2x20xf32>
    %155 = arith.addf %150, %154 : vector<2x20xf32>
    %156 = math.tanh %155 : vector<2x20xf32>
    %cst_58 = arith.constant 1.000000e+00 : f32
    %157 = vector.broadcast %cst_58 : f32 to vector<2x20xf32>
    %158 = arith.subf %157, %149 : vector<2x20xf32>
    %159 = arith.mulf %158, %156 : vector<2x20xf32>
    %160 = arith.mulf %149, %135 : vector<2x20xf32>
    %161 = arith.addf %159, %160 : vector<2x20xf32>
    %c10_59 = arith.constant 10 : index
    %c0_60 = arith.constant 0 : index
    %162 = vector.load %arg11[%c10_59, %c0_60] : memref<16x20xf32, #tpu.memory_space<vmem>>, vector<2x20xf32>
    tpu.vector_store %arg11[%c10_59, %c0_60], %161 {strides = array<i32>} : memref<16x20xf32, #tpu.memory_space<vmem>>, vector<2x20xf32>,
    %c12 = arith.constant 12 : index
    %c0_61 = arith.constant 0 : index
    %163 = vector.load %arg10[%c12, %c0_61] : memref<16x60xf32, #tpu.memory_space<vmem>>, vector<2x60xf32>
    %c0_62 = arith.constant 0 : index
    %c0_63 = arith.constant 0 : index
    %164 = vector.load %arg5[%c0_62, %c0_63] : memref<20x60xf32, #tpu.memory_space<vmem>>, vector<20x60xf32>
    %cst_64 = arith.constant dense<0.000000e+00> : vector<2x60xf32>
    %165 = tpu.matmul %161, %164, %cst_64 {dimension_numbers = #tpu.dot_dimension_numbers<[1], [0], [0], [1], [0, 0, 1, 1], [], []>} : vector<2x20xf32>, vector<20x60xf32>, vector<2x60xf32> -> vector<2x60xf32>
    %166 = vector.extract_strided_slice %163 {offsets = [0, 0], sizes = [2, 40], strides = [1, 1]} : vector<2x60xf32> to vector<2x40xf32>
    %167 = vector.extract_strided_slice %165 {offsets = [0, 0], sizes = [2, 40], strides = [1, 1]} : vector<2x60xf32> to vector<2x40xf32>
    %168 = arith.addf %166, %167 : vector<2x40xf32>
    %169 = arith.negf %168 : vector<2x40xf32>
    %170 = math.exp %169 : vector<2x40xf32>
    %cst_65 = arith.constant 1.000000e+00 : f32
    %171 = vector.broadcast %cst_65 : f32 to vector<2x40xf32>
    %172 = arith.addf %171, %170 : vector<2x40xf32>
    %173 = arith.divf %171, %172 : vector<2x40xf32>
    %174 = vector.extract_strided_slice %173 {offsets = [0, 0], sizes = [2, 20], strides = [1, 1]} : vector<2x40xf32> to vector<2x20xf32>
    %175 = vector.extract_strided_slice %173 {offsets = [0, 20], sizes = [2, 20], strides = [1, 1]} : vector<2x40xf32> to vector<2x20xf32>
    %176 = vector.extract_strided_slice %163 {offsets = [0, 40], sizes = [2, 20], strides = [1, 1]} : vector<2x60xf32> to vector<2x20xf32>
    %177 = vector.extract_strided_slice %165 {offsets = [0, 40], sizes = [2, 20], strides = [1, 1]} : vector<2x60xf32> to vector<2x20xf32>
    %178 = vector.broadcast %14 : vector<1x20xf32> to vector<2x20xf32>
    %179 = arith.addf %177, %178 : vector<2x20xf32>
    %180 = arith.mulf %174, %179 : vector<2x20xf32>
    %181 = arith.addf %176, %180 : vector<2x20xf32>
    %182 = math.tanh %181 : vector<2x20xf32>
    %cst_66 = arith.constant 1.000000e+00 : f32
    %183 = vector.broadcast %cst_66 : f32 to vector<2x20xf32>
    %184 = arith.subf %183, %175 : vector<2x20xf32>
    %185 = arith.mulf %184, %182 : vector<2x20xf32>
    %186 = arith.mulf %175, %161 : vector<2x20xf32>
    %187 = arith.addf %185, %186 : vector<2x20xf32>
    %c12_67 = arith.constant 12 : index
    %c0_68 = arith.constant 0 : index
    %188 = vector.load %arg11[%c12_67, %c0_68] : memref<16x20xf32, #tpu.memory_space<vmem>>, vector<2x20xf32>
    tpu.vector_store %arg11[%c12_67, %c0_68], %187 {strides = array<i32>} : memref<16x20xf32, #tpu.memory_space<vmem>>, vector<2x20xf32>,
    %c14 = arith.constant 14 : index
    %c0_69 = arith.constant 0 : index
    %189 = vector.load %arg10[%c14, %c0_69] : memref<16x60xf32, #tpu.memory_space<vmem>>, vector<2x60xf32>
    %c0_70 = arith.constant 0 : index
    %c0_71 = arith.constant 0 : index
    %190 = vector.load %arg5[%c0_70, %c0_71] : memref<20x60xf32, #tpu.memory_space<vmem>>, vector<20x60xf32>
    %cst_72 = arith.constant dense<0.000000e+00> : vector<2x60xf32>
    %191 = tpu.matmul %187, %190, %cst_72 {dimension_numbers = #tpu.dot_dimension_numbers<[1], [0], [0], [1], [0, 0, 1, 1], [], []>} : vector<2x20xf32>, vector<20x60xf32>, vector<2x60xf32> -> vector<2x60xf32>
    %192 = vector.extract_strided_slice %189 {offsets = [0, 0], sizes = [2, 40], strides = [1, 1]} : vector<2x60xf32> to vector<2x40xf32>
    %193 = vector.extract_strided_slice %191 {offsets = [0, 0], sizes = [2, 40], strides = [1, 1]} : vector<2x60xf32> to vector<2x40xf32>
    %194 = arith.addf %192, %193 : vector<2x40xf32>
    %195 = arith.negf %194 : vector<2x40xf32>
    %196 = math.exp %195 : vector<2x40xf32>
    %cst_73 = arith.constant 1.000000e+00 : f32
    %197 = vector.broadcast %cst_73 : f32 to vector<2x40xf32>
    %198 = arith.addf %197, %196 : vector<2x40xf32>
    %199 = arith.divf %197, %198 : vector<2x40xf32>
    %200 = vector.extract_strided_slice %199 {offsets = [0, 0], sizes = [2, 20], strides = [1, 1]} : vector<2x40xf32> to vector<2x20xf32>
    %201 = vector.extract_strided_slice %199 {offsets = [0, 20], sizes = [2, 20], strides = [1, 1]} : vector<2x40xf32> to vector<2x20xf32>
    %202 = vector.extract_strided_slice %189 {offsets = [0, 40], sizes = [2, 20], strides = [1, 1]} : vector<2x60xf32> to vector<2x20xf32>
    %203 = vector.extract_strided_slice %191 {offsets = [0, 40], sizes = [2, 20], strides = [1, 1]} : vector<2x60xf32> to vector<2x20xf32>
    %204 = vector.broadcast %14 : vector<1x20xf32> to vector<2x20xf32>
    %205 = arith.addf %203, %204 : vector<2x20xf32>
    %206 = arith.mulf %200, %205 : vector<2x20xf32>
    %207 = arith.addf %202, %206 : vector<2x20xf32>
    %208 = math.tanh %207 : vector<2x20xf32>
    %cst_74 = arith.constant 1.000000e+00 : f32
    %209 = vector.broadcast %cst_74 : f32 to vector<2x20xf32>
    %210 = arith.subf %209, %201 : vector<2x20xf32>
    %211 = arith.mulf %210, %208 : vector<2x20xf32>
    %212 = arith.mulf %201, %187 : vector<2x20xf32>
    %213 = arith.addf %211, %212 : vector<2x20xf32>
    %c14_75 = arith.constant 14 : index
    %c0_76 = arith.constant 0 : index
    %214 = vector.load %arg11[%c14_75, %c0_76] : memref<16x20xf32, #tpu.memory_space<vmem>>, vector<2x20xf32>
    tpu.vector_store %arg11[%c14_75, %c0_76], %213 {strides = array<i32>} : memref<16x20xf32, #tpu.memory_space<vmem>>, vector<2x20xf32>,
    %c0_77 = arith.constant 0 : index
    %c0_78 = arith.constant 0 : index
    %215 = vector.load %arg11[%c0_77, %c0_78] : memref<16x20xf32, #tpu.memory_space<vmem>>, vector<16x20xf32>
    %c0_79 = arith.constant 0 : index
    %c0_80 = arith.constant 0 : index
    %216 = vector.load %arg7[%c0_79, %c0_80] : memref<20x128xf32, #tpu.memory_space<vmem>>, vector<20x128xf32>
    %cst_81 = arith.constant dense<0.000000e+00> : vector<16x128xf32>
    %217 = tpu.matmul %215, %216, %cst_81 {dimension_numbers = #tpu.dot_dimension_numbers<[1], [0], [0], [1], [0, 0, 1, 1], [], []>} : vector<16x20xf32>, vector<20x128xf32>, vector<16x128xf32> -> vector<16x128xf32>
    %c0_82 = arith.constant 0 : index
    %c0_83 = arith.constant 0 : index
    %218 = vector.load %arg8[%c0_82, %c0_83] : memref<1x128xf32, #tpu.memory_space<vmem>>, vector<1x128xf32>
    %219 = vector.broadcast %218 : vector<1x128xf32> to vector<16x128xf32>
    %220 = arith.addf %217, %219 : vector<16x128xf32>
    %c0_84 = arith.constant 0 : index
    %c0_85 = arith.constant 0 : index
    %221 = vector.load %arg9[%c0_84, %c0_85] : memref<16x128xf32, #tpu.memory_space<vmem>>, vector<16x128xf32>
    tpu.vector_store %arg9[%c0_84, %c0_85], %220 {strides = array<i32>} : memref<16x128xf32, #tpu.memory_space<vmem>>, vector<16x128xf32>,
    return
  }
}

</mosaic_0001>

<bundles_post_ra>
// kernel: tpu_custom_call.1
= control target key start
LH: loop header
LB: loop body
LE: loop exit
PB: predicated region body
PF: predicated region fallthrough
CT: control target
= control target key end

     0   :  { %vm99_vm0 = vcmask 1044480   ;;  %s1136_s0 = inlined_call_operand.vmem [shape: f32[16,64], index: 0, kind: input, shape index: {}]   ;;  %s1137_s1 = inlined_call_operand.vmem [shape: f32[64,69], index: 1, kind: input, shape index: {}]   ;;  %s1138_s2 = inlined_call_operand.vmem [shape: f32[1,69], index: 2, kind: input, shape index: {}]   ;;  %s1139_s3 = inlined_call_operand.vmem [shape: f32[69,60], index: 3, kind: input, shape index: {}]   ;;  %s1140_s4 = inlined_call_operand.vmem [shape: f32[1,60], index: 4, kind: input, shape index: {}]   ;;  %s1141_s5 = inlined_call_operand.vmem [shape: f32[20,60], index: 5, kind: input, shape index: {}]   ;;  %s1142_s6 = inlined_call_operand.vmem [shape: f32[1,20], index: 6, kind: input, shape index: {}]   ;;  %s1143_s7 = inlined_call_operand.vmem [shape: f32[20,128], index: 7, kind: input, shape index: {}]   ;;  %s1144_s8 = inlined_call_operand.vmem [shape: f32[1,128], index: 8, kind: input, shape index: {}]   ;;  %s1145_s9 = inlined_call_operand.hbm [shape: f32[16,128], index: 9, kind: output, shape index: {}]  }
   0x1   :  { %v42_v0 = vld [vmem:[%s1137_s1 + $0x38] sm:$0xff]  ;;  %v41_v1 = vld [vmem:[%s1137_s1 + $0x30] sm:$0xff]  ;;  %v40_v2 = vld [vmem:[%s1137_s1 + $0x28] sm:$0xff] }
   0x2   :  { %62 = vmatpush.msra.mxu0 %v42_v0  ;;  %v87_v3 = vld [vmem:[%s1139_s3 + $0x40] sm:$0x1f]  ;;  %v86_v4 = vld [vmem:[%s1139_s3 + $0x38] sm:$0xff]  ;;  %v85_v7 = vld [vmem:[%s1139_s3 + $0x30] sm:$0xff] }
   0x3   :  { %v39_v5 = vld [vmem:[%s1137_s1 + $0x20] sm:$0xff]  ;;  %v38_v6 = vld [vmem:[%s1137_s1 + $0x18] sm:$0xff]  ;;  %758 = vmatpush.msk.msra.mxu1 %vm99_vm0, %v87_v3 }
   0x4   :  { %63 = vmatpush.msra.mxu0 %v41_v1 }
   0x5   :  { %111 = vmatpush.msra.mxu1 %v86_v4 }
   0x6   :  { %64 = vmatpush.msra.mxu0 %v40_v2 }
   0x7   :  { %14 = vsyncpa [#allocation5], 0  ;;  %v84_v8 = vld [vmem:[%s1139_s3 + $0x28] sm:$0xff]  ;;  %v37_v9 = vld [vmem:[%s1137_s1 + $0x10] sm:$0xff]  ;;  %112 = vmatpush.msra.mxu1 %v85_v7  ;;  %vm47_vm1 = vcmask 523264   ;;  %vm92_vm2 = vcmask 564224  }
   0x8   :  { %65 = vmatpush.msra.mxu0 %v39_v5  ;;  %v83_v10 = vld [vmem:[%s1139_s3 + $0x20] sm:$0xff]  ;;  %v36_v11 = vld [vmem:[%s1137_s1 + $0x8] sm:$0xff]  ;;  %v82_v12 = vld [vmem:[%s1139_s3 + $0x18] sm:$0xff]  ;;  %vm126_vm3 = vcmask 490496   ;;  %s871_s27 = smov 108   ;;  %vm179_vm8 = vcmask 1043456  }
   0x9   :  { %113 = vmatpush.msra.mxu1 %v84_v8  ;;  %v35_v13 = vld [vmem:[%s1137_s1] sm:$0xff]  ;;  %v81_v15 = vld [vmem:[%s1139_s3 + $0x10] sm:$0xff]  ;;  %v80_v16 = vld [vmem:[%s1139_s3 + $0x8] sm:$0xff]  ;;  %vm170_vm9 = vcmask 156672   ;;  %vm176_vm10 = vcmask 162816   ;;  %s872_s12 = smov 88  }
   0xa   :  { %66 = vmatpush.msra.mxu0 %v38_v6  ;;  %v33_v14 = vld [vmem:[%s1136_s0] sm:$0xff]  ;;  %v175_v44 = vld [vmem:[%s1141_s5 + $0x10] sm:$0xf]  ;;  %v1006_v45 = vld [vmem:[%s1141_s5 + $0x8] sm:$0xff]  ;;  %s744_s10 = sshll.u32 %s1145_s9, 4  ;;  %s874_s11 = smov 128   ;;  %s745_s10 = int_to_ptr.hbm [resolvable:$true] %s744_s10 }
   0xb   :  { %114 = vmatpush.msra.mxu1 %v83_v10  ;;  %v79_v17 = vld [vmem:[%s1139_s3] sm:$0xff]  ;;  %762 = vmatpush.msk.msra.mxu2 %vm179_vm8, %v175_v44  ;;  %v254_v10 = vld [vmem:[%s1141_s5 + $0x10] sm:$0xf] }
   0xc   :  { %67 = vmatpush.msra.mxu0 %v37_v9  ;;  %v984_v18 = vld [vmem:[%s1138_s2] ss:$0 sm:$0xff] }
   0xd   :  { %115 = vmatpush.msra.mxu1 %v82_v12  ;;  %v991_v22 = vld [vmem:[%s1140_s4] ss:$0 sm:$0xff]  ;;  %s870_s4 = smov 40   ;;  %197 = vmatpush.msra.mxu2 %v1006_v45 }
   0xe   :  { %68 = vmatpush.msra.mxu0 %v36_v11  ;;  %v794_v36 = vld [vmem:[%s1142_s6] ss:$0 sm:$0xff]  ;;  %v34_v11 = vld [vmem:[%s1136_s0 + $0x8] sm:$0xff] }
   0xf   :  { %116 = vmatpush.msra.mxu1 %v81_v15  ;;  %v1012_v46 = vld [vmem:[%s1141_s5] sm:$0xff] }
  0x10   :  { %69 = vmatpush.msra.mxu0 %v35_v13  ;;  %198 = vmatpush.msra.mxu2 %v1012_v46 }
  0x11   :  { %756 = vmatmul.msk.f32.vlgmr.msra.gmra.mxu0 %vm47_vm1, %v33_v14  ;;  %117 = vmatpush.msra.mxu1 %v80_v16 }
  0x12   :  { %765 = vmatpush.msk.msrb.mxu0 %vm179_vm8, %v254_v10 }
  0x13   :  { %118 = vmatpush.msra.mxu1 %v79_v17 }
  0x14   :  { %274 = vmatpush.msrb.mxu0 %v1006_v45 }
  0x16   :  { %275 = vmatpush.msrb.mxu0 %v1012_v46 }
  0x19   :  { %757 = vmatmul.msk.f32.gmra.mxu0 %vm47_vm1, %v34_v11 }
  0x8e   :  { %v71_v19 = vpop.f32.mrf.mxu0 }
  0x8f   :  { %v72_v20 = vadd.f32 %v984_v18, %v71_v19 }
  0x91   :  { %v77_v21 = vmax.f32 %v72_v20, 0.0 }
  0x93   :  { %759 = vmatmul.msk.f32.vlgmr.msra.gmra.mxu1 %vm92_vm2, %v77_v21 }
  0x96   :  { %v74_v17 = vpop.f32.mrf.mxu0 }
  0x97   :  { %v75_v19 = vadd.f32 %v984_v18, %v74_v17 }
  0x99   :  { %v78_v20 = vmax.f32 %v75_v19, 0.0 }
  0x9b   :  { %760 = vmatmul.msk.f32.gmra.mxu1 %vm92_vm2, %v78_v20 }
 0x110   :  { %v120_v23 = vpop.f32.mrf.mxu1 }
 0x111   :  { %v121_v24 = vadd.f32 %v991_v22, %v120_v23 }
 0x113   :  { %127 = vst.msk [vmem:[#allocation2] sm:$0xff] %vm126_vm3, %v121_v24 }
 0x118   :  { %v123_v18 = vpop.f32.mrf.mxu1 }
 0x11a   :  { %v130_v25 = vld [vmem:[#allocation2] sm:$0x3]  ;;  %v172_v54 = vld [vmem:[#allocation2 + $0x2] sm:$0x3] }
 0x11b   :  { %v761_v26 = vmul.f32 -1.442695, %v130_v25 }
 0x11d   :  { %796 = vpow2.f32 %v761_v26 }
 0x123   :  { %v797_v27 = vpop.eup %796 }
 0x124   :  { %v134_v28 = vadd.f32 1.0, %v797_v27 }
 0x126   :  { %798 = vrcp.f32 %v134_v28  ;;  %v146_v32 = vand.u32 2147483648, %v134_v28  ;;  %v144_v34 = vand.u32 2147483647, %v134_v28  ;;  %vm140_vm5 = vweird.f32 %v134_v28 }
 0x128   :  { %v147_v37 = vor.u32 1.1754944e-38, %v146_v32  ;;  %vm145_vm7 = vcmp.eq.f32.partialorder %v144_v34, 8.507059e+37 }
 0x12c   :  { %v799_v29 = vpop.eup %798 }
 0x12d   :  { %v136_v30 = vmul.f32 %v799_v29, %v134_v28  ;;  %vm141_vm4 = vweird.f32 %v799_v29 }
 0x12e   :  { %vm142_vm6 = vmor %vm140_vm5, %vm141_vm4 }
 0x12f   :  { %v137_v31 = vsub.f32 1.0, %v136_v30  ;;  %v124_v30 = vadd.f32 %v991_v22, %v123_v18 }
 0x131   :  { %v138_v33 = vmul.f32 %v799_v29, %v137_v31  ;;  %128 = vst.msk [vmem:[#allocation2 + $0x8] sm:$0xff] %vm126_vm3, %v124_v30 }
 0x133   :  { %v139_v35 = vadd.f32 %v799_v29, %v138_v33 }
 0x135   :  { %v143_v38 = vsel %vm142_vm6, %v799_v29, %v139_v35 }
 0x136   :  { %v148_v39 = vsel %vm145_vm7, %v147_v37, %v143_v38 }
 0x137   :  { %v153_v40 = vmul.f32 %v794_v36, %v148_v39  ;;  %v160_v47 = vsub.f32 1.0, %v148_v39 }
 0x139   :  { %155 = vrot.lane.b32.xlu0 %v153_v40, %s870_s4 }
 0x1ab   :  { %v156_v41 = vpop.permute.xlu0 %155 }
 0x1ac   :  { %v158_v42 = vadd.f32 %v156_v41, %v130_v25  ;;  %v251_v25 = vld [vmem:[#allocation2 + $0x4] sm:$0x3] }
 0x1ae   :  { %800 = vtanh.f32 %v158_v42 }
 0x1b4   :  { %v801_v43 = vpop.eup %800 }
 0x1b5   :  { %162 = vrot.lane.b32.xlu0 %v801_v43, %s871_s27 }
 0x227   :  { %v163_v48 = vpop.permute.xlu0 %162 }
 0x228   :  { %v165_v49 = vmul.f32 %v163_v48, %v160_v47  ;;  %v328_v47 = vld [vmem:[%s1141_s5 + $0x10] sm:$0xf] }
 0x229   :  { %768 = vmatpush.msk.msrb.mxu2 %vm179_vm8, %v328_v47 }
 0x22a   :  { %167 = vrot.lane.b32.xlu1 %v165_v49, %s871_s27 }
 0x22b   :  { %348 = vmatpush.msrb.mxu2 %v1006_v45 }
 0x22d   :  { %349 = vmatpush.msrb.mxu2 %v1012_v46 }
 0x232   :  { %223 = vrot.lane.b32.xlu1 %v794_v36, %s870_s4 }
 0x29c   :  { %v168_v50 = vpop.permute.xlu1 %167 }
 0x29d   :  { %171 = vst.msk [vmem:[#allocation3] sm:$0x3] %vm170_vm9, %v168_v50  ;;  %763 = vmatmul.msk.f32.vlgmr.msra.gmra.mxu2 %vm176_vm10, %v168_v50 }
 0x2a4   :  { %v1020_v51 = vpop.permute.xlu1 %223 }
 0x320   :  { %v200_v52 = vpop.f32.mrf.mxu2 }
 0x321   :  { %v226_v53 = vadd.f32 %v1020_v51, %v200_v52  ;;  %v203_v55 = vadd.f32 %v200_v52, %v172_v54 }
 0x323   :  { %228 = vrot.lane.b32.xlu2 %v226_v53, %s872_s12  ;;  %v764_v56 = vmul.f32 -1.442695, %v203_v55 }
 0x325   :  { %802 = vpow2.f32 %v764_v56 }
 0x32b   :  { %v803_v57 = vpop.eup %802 }
 0x32c   :  { %v207_v58 = vadd.f32 1.0, %v803_v57  ;;  %v325_v57 = vld [vmem:[#allocation2 + $0x6] sm:$0x3] }
 0x32e   :  { %804 = vrcp.f32 %v207_v58  ;;  %v219_v0 = vand.u32 2147483648, %v207_v58  ;;  %vm213_vm12 = vweird.f32 %v207_v58  ;;  %v217_v1 = vand.u32 2147483647, %v207_v58 }
 0x330   :  { %v220_v3 = vor.u32 1.1754944e-38, %v219_v0  ;;  %vm218_vm14 = vcmp.eq.f32.partialorder %v217_v1, 8.507059e+37 }
 0x334   :  { %v805_v59 = vpop.eup %804 }
 0x335   :  { %v209_v60 = vmul.f32 %v805_v59, %v207_v58  ;;  %vm214_vm11 = vweird.f32 %v805_v59 }
 0x336   :  { %vm215_vm13 = vmor %vm213_vm12, %vm214_vm11 }
 0x337   :  { %v210_v61 = vsub.f32 1.0, %v209_v60 }
 0x339   :  { %v211_v62 = vmul.f32 %v805_v59, %v210_v61 }
 0x33b   :  { %v212_v63 = vadd.f32 %v805_v59, %v211_v62 }
 0x33d   :  { %v216_v2 = vsel %vm215_vm13, %v805_v59, %v212_v63 }
 0x33e   :  { %v221_v4 = vsel %vm218_vm14, %v220_v3, %v216_v2 }
 0x33f   :  { %v238_v12 = vsub.f32 1.0, %v221_v4  ;;  %v244_v14 = vmul.f32 %v221_v4, %v165_v49 }
 0x37d   :  { %v229_v5 = vpop.permute.xlu2 %228 }
 0x37e   :  { %v231_v6 = vmul.f32 %v229_v5, %v221_v4 }
 0x380   :  { %233 = vrot.lane.b32.xlu2 %v231_v6, %s870_s4 }
 0x3da   :  { %v234_v7 = vpop.permute.xlu2 %233 }
 0x3db   :  { %v236_v8 = vadd.f32 %v234_v7, %v172_v54 }
 0x3dd   :  { %806 = vtanh.f32 %v236_v8 }
 0x3e3   :  { %v807_v9 = vpop.eup %806 }
 0x3e4   :  { %240 = vrot.lane.b32.xlu0 %v807_v9, %s871_s27 }
 0x456   :  { %v241_v13 = vpop.permute.xlu0 %240 }
 0x457   :  { %v243_v15 = vmul.f32 %v241_v13, %v238_v12  ;;  %v402_v13 = vld [vmem:[%s1141_s5 + $0x10] sm:$0xf] }
 0x458   :  { %771 = vmatpush.msk.msra.mxu3 %vm179_vm8, %v402_v13 }
 0x459   :  { %v245_v16 = vadd.f32 %v244_v14, %v243_v15 }
 0x45a   :  { %422 = vmatpush.msra.mxu3 %v1006_v45 }
 0x45b   :  { %247 = vrot.lane.b32.xlu1 %v245_v16, %s871_s27 }
 0x45c   :  { %423 = vmatpush.msra.mxu3 %v1012_v46 }
 0x4cd   :  { %v248_v21 = vpop.permute.xlu1 %247 }
 0x4ce   :  { %250 = vst.msk [vmem:[#allocation3 + $0x2] sm:$0x3] %vm170_vm9, %v248_v21  ;;  %766 = vmatmul.msk.f32.vlgmr.msrb.gmra.mxu0 %vm176_vm10, %v248_v21 }
 0x54b   :  { %v277_v23 = vpop.f32.mrf.mxu0 }
 0x54c   :  { %v300_v24 = vadd.f32 %v277_v23, %v1020_v51  ;;  %v280_v26 = vadd.f32 %v277_v23, %v251_v25 }
 0x54e   :  { %302 = vrot.lane.b32.xlu2 %v300_v24, %s872_s12  ;;  %v767_v27 = vmul.f32 -1.442695, %v280_v26  ;;  %v399_v24 = vld [vmem:[#allocation2 + $0x8] sm:$0x3] }
 0x550   :  { %808 = vpow2.f32 %v767_v27 }
 0x556   :  { %v809_v28 = vpop.eup %808 }
 0x557   :  { %v284_v29 = vadd.f32 1.0, %v809_v28 }
 0x559   :  { %810 = vrcp.f32 %v284_v29  ;;  %v296_v36 = vand.u32 2147483648, %v284_v29  ;;  %vm290_vm0 = vweird.f32 %v284_v29  ;;  %v294_v37 = vand.u32 2147483647, %v284_v29 }
 0x55b   :  { %v297_v39 = vor.u32 1.1754944e-38, %v296_v36  ;;  %vm295_vm2 = vcmp.eq.f32.partialorder %v294_v37, 8.507059e+37 }
 0x55f   :  { %v811_v31 = vpop.eup %810 }
 0x560   :  { %v286_v32 = vmul.f32 %v811_v31, %v284_v29  ;;  %vm291_vm15 = vweird.f32 %v811_v31 }
 0x561   :  { %vm292_vm1 = vmor %vm290_vm0, %vm291_vm15 }
 0x562   :  { %v287_v33 = vsub.f32 1.0, %v286_v32 }
 0x564   :  { %v288_v34 = vmul.f32 %v811_v31, %v287_v33 }
 0x566   :  { %v289_v35 = vadd.f32 %v811_v31, %v288_v34 }
 0x568   :  { %v293_v38 = vsel %vm292_vm1, %v811_v31, %v289_v35 }
 0x569   :  { %v298_v41 = vsel %vm295_vm2, %v297_v39, %v293_v38 }
 0x56a   :  { %v312_v48 = vsub.f32 1.0, %v298_v41  ;;  %v318_v50 = vmul.f32 %v298_v41, %v245_v16 }
 0x5a8   :  { %v303_v40 = vpop.permute.xlu2 %302 }
 0x5a9   :  { %v305_v42 = vmul.f32 %v303_v40, %v298_v41 }
 0x5ab   :  { %307 = vrot.lane.b32.xlu0 %v305_v42, %s870_s4 }
 0x61d   :  { %v308_v22 = vpop.permute.xlu0 %307 }
 0x61e   :  { %v310_v43 = vadd.f32 %v308_v22, %v251_v25  ;;  %v476_v22 = vld [vmem:[%s1141_s5 + $0x10] sm:$0xf] }
 0x61f   :  { %774 = vmatpush.msk.msra.mxu2 %vm179_vm8, %v476_v22 }
 0x620   :  { %812 = vtanh.f32 %v310_v43 }
 0x621   :  { %496 = vmatpush.msra.mxu2 %v1006_v45 }
 0x623   :  { %497 = vmatpush.msra.mxu2 %v1012_v46 }
 0x626   :  { %v813_v44 = vpop.eup %812 }
 0x627   :  { %314 = vrot.lane.b32.xlu1 %v813_v44, %s871_s27 }
 0x699   :  { %v315_v49 = vpop.permute.xlu1 %314 }
 0x69a   :  { %v317_v52 = vmul.f32 %v315_v49, %v312_v48 }
 0x69c   :  { %v319_v53 = vadd.f32 %v318_v50, %v317_v52 }
 0x69e   :  { %321 = vrot.lane.b32.xlu2 %v319_v53, %s871_s27 }
 0x6f8   :  { %v322_v54 = vpop.permute.xlu2 %321 }
 0x6f9   :  { %324 = vst.msk [vmem:[#allocation3 + $0x4] sm:$0x3] %vm170_vm9, %v322_v54  ;;  %769 = vmatmul.msk.f32.vlgmr.msrb.gmra.mxu2 %vm176_vm10, %v322_v54  ;;  %v473_v54 = vld [vmem:[#allocation2 + $0xa] sm:$0x3] }
 0x77c   :  { %v351_v55 = vpop.f32.mrf.mxu2 }
 0x77d   :  { %v374_v56 = vadd.f32 %v351_v55, %v1020_v51  ;;  %v354_v58 = vadd.f32 %v351_v55, %v325_v57 }
 0x77f   :  { %376 = vrot.lane.b32.xlu0 %v374_v56, %s872_s12  ;;  %v770_v59 = vmul.f32 -1.442695, %v354_v58 }
 0x781   :  { %814 = vpow2.f32 %v770_v59 }
 0x787   :  { %v815_v60 = vpop.eup %814 }
 0x788   :  { %v358_v61 = vadd.f32 1.0, %v815_v60 }
 0x78a   :  { %816 = vrcp.f32 %v358_v61  ;;  %v370_v3 = vand.u32 2147483648, %v358_v61  ;;  %vm364_vm4 = vweird.f32 %v358_v61  ;;  %v368_v4 = vand.u32 2147483647, %v358_v61 }
 0x78c   :  { %v371_v6 = vor.u32 1.1754944e-38, %v370_v3  ;;  %vm369_vm6 = vcmp.eq.f32.partialorder %v368_v4, 8.507059e+37 }
 0x790   :  { %v817_v62 = vpop.eup %816 }
 0x791   :  { %v360_v63 = vmul.f32 %v817_v62, %v358_v61  ;;  %vm365_vm3 = vweird.f32 %v817_v62 }
 0x792   :  { %vm366_vm5 = vmor %vm364_vm4, %vm365_vm3 }
 0x793   :  { %v361_v0 = vsub.f32 1.0, %v360_v63 }
 0x795   :  { %v362_v1 = vmul.f32 %v817_v62, %v361_v0 }
 0x797   :  { %v363_v2 = vadd.f32 %v817_v62, %v362_v1 }
 0x799   :  { %v367_v5 = vsel %vm366_vm5, %v817_v62, %v363_v2 }
 0x79a   :  { %v372_v8 = vsel %vm369_vm6, %v371_v6, %v367_v5 }
 0x79b   :  { %v386_v14 = vsub.f32 1.0, %v372_v8  ;;  %v392_v16 = vmul.f32 %v372_v8, %v319_v53 }
 0x7f1   :  { %v377_v7 = vpop.permute.xlu0 %376 }
 0x7f2   :  { %v379_v9 = vmul.f32 %v377_v7, %v372_v8 }
 0x7f4   :  { %381 = vrot.lane.b32.xlu1 %v379_v9, %s870_s4 }
 0x866   :  { %v382_v10 = vpop.permute.xlu1 %381 }
 0x867   :  { %v384_v11 = vadd.f32 %v382_v10, %v325_v57  ;;  %v550_v10 = vld [vmem:[%s1141_s5 + $0x10] sm:$0xf] }
 0x868   :  { %777 = vmatpush.msk.msrb.mxu3 %vm179_vm8, %v550_v10 }
 0x869   :  { %818 = vtanh.f32 %v384_v11 }
 0x86a   :  { %570 = vmatpush.msrb.mxu3 %v1006_v45 }
 0x86c   :  { %571 = vmatpush.msrb.mxu3 %v1012_v46 }
 0x86f   :  { %v819_v12 = vpop.eup %818 }
 0x870   :  { %388 = vrot.lane.b32.xlu2 %v819_v12, %s871_s27 }
 0x8ca   :  { %v389_v15 = vpop.permute.xlu2 %388 }
 0x8cb   :  { %v391_v17 = vmul.f32 %v389_v15, %v386_v14 }
 0x8cd   :  { %v393_v19 = vadd.f32 %v392_v16, %v391_v17  ;;  %v699_v16 = vld [vmem:[%s1143_s7 + $0x10] sm:$0xf]  ;;  %v698_v17 = vld [vmem:[%s1143_s7 + $0x8] sm:$0xff] }
 0x8cf   :  { %395 = vrot.lane.b32.xlu0 %v393_v19, %s871_s27 }
 0x941   :  { %v396_v20 = vpop.permute.xlu0 %395 }
 0x942   :  { %398 = vst.msk [vmem:[#allocation3 + $0x6] sm:$0x3] %vm170_vm9, %v396_v20  ;;  %772 = vmatmul.msk.f32.vlgmr.msra.gmra.mxu3 %vm176_vm10, %v396_v20 }
 0x943   :  { %783 = vmatpush.msk.msra.mxu3 %vm179_vm8, %v699_v16 }
 0x945   :  { %727 = vmatpush.msra.mxu3 %v698_v17 }
 0x9c5   :  { %v425_v21 = vpop.f32.mrf.mxu3 }
 0x9c6   :  { %v448_v23 = vadd.f32 %v425_v21, %v1020_v51  ;;  %v428_v25 = vadd.f32 %v425_v21, %v399_v24  ;;  %v695_v21 = vld [vmem:[#allocation3] sm:$0xff] }
 0x9c8   :  { %450 = vrot.lane.b32.xlu1 %v448_v23, %s872_s12  ;;  %v773_v26 = vmul.f32 -1.442695, %v428_v25  ;;  %v1111_v25 = vld [vmem:[%s1144_s8] ss:$0 sm:$0xff] }
 0x9ca   :  { %820 = vpow2.f32 %v773_v26 }
 0x9d0   :  { %v821_v27 = vpop.eup %820 }
 0x9d1   :  { %v432_v28 = vadd.f32 1.0, %v821_v27 }
 0x9d3   :  { %822 = vrcp.f32 %v432_v28  ;;  %v444_v33 = vand.u32 2147483648, %v432_v28  ;;  %vm438_vm11 = vweird.f32 %v432_v28  ;;  %v442_v34 = vand.u32 2147483647, %v432_v28 }
 0x9d5   :  { %v445_v36 = vor.u32 1.1754944e-38, %v444_v33  ;;  %vm443_vm13 = vcmp.eq.f32.partialorder %v442_v34, 8.507059e+37 }
 0x9d9   :  { %v823_v29 = vpop.eup %822 }
 0x9da   :  { %v434_v18 = vmul.f32 %v823_v29, %v432_v28  ;;  %vm439_vm7 = vweird.f32 %v823_v29  ;;  %v547_v28 = vld [vmem:[#allocation2 + $0xc] sm:$0x3] }
 0x9db   :  { %vm440_vm12 = vmor %vm438_vm11, %vm439_vm7 }
 0x9dc   :  { %v435_v30 = vsub.f32 1.0, %v434_v18 }
 0x9de   :  { %v436_v31 = vmul.f32 %v823_v29, %v435_v30 }
 0x9e0   :  { %v437_v32 = vadd.f32 %v823_v29, %v436_v31 }
 0x9e2   :  { %v441_v35 = vsel %vm440_vm12, %v823_v29, %v437_v32 }
 0x9e3   :  { %v446_v38 = vsel %vm443_vm13, %v445_v36, %v441_v35 }
 0x9e4   :  { %v460_v43 = vsub.f32 1.0, %v446_v38  ;;  %v466_v47 = vmul.f32 %v446_v38, %v393_v19  ;;  %v697_v19 = vld [vmem:[%s1143_s7] sm:$0xff] }
 0x9e5   :  { %728 = vmatpush.msra.mxu3 %v697_v19 }
 0xa3a   :  { %v451_v37 = vpop.permute.xlu1 %450 }
 0xa3b   :  { %v453_v39 = vmul.f32 %v451_v37, %v446_v38 }
 0xa3d   :  { %455 = vrot.lane.b32.xlu2 %v453_v39, %s870_s4 }
 0xa97   :  { %v456_v40 = vpop.permute.xlu2 %455 }
 0xa98   :  { %v458_v41 = vadd.f32 %v456_v40, %v399_v24 }
 0xa9a   :  { %824 = vtanh.f32 %v458_v41 }
 0xaa0   :  { %v825_v42 = vpop.eup %824 }
 0xaa1   :  { %462 = vrot.lane.b32.xlu0 %v825_v42, %s871_s27 }
 0xb13   :  { %v463_v44 = vpop.permute.xlu0 %462 }
 0xb14   :  { %v465_v48 = vmul.f32 %v463_v44, %v460_v43 }
 0xb16   :  { %v467_v49 = vadd.f32 %v466_v47, %v465_v48  ;;  %v624_v48 = vld [vmem:[%s1141_s5 + $0x10] sm:$0xf]  ;;  %s873_s5 = smov [#allocation4]  }
 0xb17   :  { %780 = vmatpush.msk.msrb.mxu2 %vm179_vm8, %v624_v48 }
 0xb18   :  { %469 = vrot.lane.b32.xlu1 %v467_v49, %s871_s27 }
 0xb19   :  { %644 = vmatpush.msrb.mxu2 %v1006_v45  ;;  %v621_v45 = vld [vmem:[#allocation2 + $0xe] sm:$0x3] }
 0xb1b   :  { %645 = vmatpush.msrb.mxu2 %v1012_v46 }
 0xb8a   :  { %v470_v50 = vpop.permute.xlu1 %469 }
 0xb8b   :  { %472 = vst.msk [vmem:[#allocation3 + $0x8] sm:$0x3] %vm170_vm9, %v470_v50  ;;  %775 = vmatmul.msk.f32.vlgmr.msra.gmra.mxu2 %vm176_vm10, %v470_v50 }
 0xc0e   :  { %v499_v52 = vpop.f32.mrf.mxu2 }
 0xc0f   :  { %v522_v53 = vadd.f32 %v499_v52, %v1020_v51  ;;  %v502_v55 = vadd.f32 %v499_v52, %v473_v54 }
 0xc11   :  { %524 = vrot.lane.b32.xlu2 %v522_v53, %s872_s12  ;;  %v776_v56 = vmul.f32 -1.442695, %v502_v55 }
 0xc13   :  { %826 = vpow2.f32 %v776_v56 }
 0xc19   :  { %v827_v57 = vpop.eup %826 }
 0xc1a   :  { %v506_v58 = vadd.f32 1.0, %v827_v57 }
 0xc1c   :  { %828 = vrcp.f32 %v506_v58  ;;  %v518_v0 = vand.u32 2147483648, %v506_v58  ;;  %vm512_vm15 = vweird.f32 %v506_v58  ;;  %v516_v1 = vand.u32 2147483647, %v506_v58 }
 0xc1e   :  { %v519_v3 = vor.u32 1.1754944e-38, %v518_v0  ;;  %vm517_vm1 = vcmp.eq.f32.partialorder %v516_v1, 8.507059e+37 }
 0xc22   :  { %v829_v59 = vpop.eup %828 }
 0xc23   :  { %v508_v60 = vmul.f32 %v829_v59, %v506_v58  ;;  %vm513_vm14 = vweird.f32 %v829_v59 }
 0xc24   :  { %vm514_vm0 = vmor %vm512_vm15, %vm513_vm14 }
 0xc25   :  { %v509_v61 = vsub.f32 1.0, %v508_v60 }
 0xc27   :  { %v510_v62 = vmul.f32 %v829_v59, %v509_v61 }
 0xc29   :  { %v511_v63 = vadd.f32 %v829_v59, %v510_v62 }
 0xc2b   :  { %v515_v2 = vsel %vm514_vm0, %v829_v59, %v511_v63 }
 0xc2c   :  { %v520_v5 = vsel %vm517_vm1, %v519_v3, %v515_v2 }
 0xc2d   :  { %v534_v11 = vsub.f32 1.0, %v520_v5  ;;  %v540_v13 = vmul.f32 %v520_v5, %v467_v49 }
 0xc6b   :  { %v525_v4 = vpop.permute.xlu2 %524 }
 0xc6c   :  { %v527_v6 = vmul.f32 %v525_v4, %v520_v5 }
 0xc6e   :  { %529 = vrot.lane.b32.xlu0 %v527_v6, %s870_s4 }
 0xce0   :  { %v530_v7 = vpop.permute.xlu0 %529 }
 0xce1   :  { %v532_v8 = vadd.f32 %v530_v7, %v473_v54 }
 0xce3   :  { %830 = vtanh.f32 %v532_v8 }
 0xce9   :  { %v831_v9 = vpop.eup %830 }
 0xcea   :  { %536 = vrot.lane.b32.xlu1 %v831_v9, %s871_s27 }
 0xd5c   :  { %v537_v12 = vpop.permute.xlu1 %536 }
 0xd5d   :  { %v539_v14 = vmul.f32 %v537_v12, %v534_v11 }
 0xd5f   :  { %v541_v15 = vadd.f32 %v540_v13, %v539_v14 }
 0xd61   :  { %543 = vrot.lane.b32.xlu2 %v541_v15, %s871_s27 }
 0xdbb   :  { %v544_v20 = vpop.permute.xlu2 %543 }
 0xdbc   :  { %546 = vst.msk [vmem:[#allocation3 + $0xa] sm:$0x3] %vm170_vm9, %v544_v20  ;;  %778 = vmatmul.msk.f32.vlgmr.msrb.gmra.mxu3 %vm176_vm10, %v544_v20 }
 0xdc4   :  { %784 = vmatmul.msk.f32.vlgmr.msra.gmra.mxu3 %vm176_vm10, %v695_v21 }
 0xe3f   :  { %v573_v23 = vpop.f32.mrf.mxu3 }
 0xe40   :  { %v596_v24 = vadd.f32 %v573_v23, %v1020_v51  ;;  %v576_v29 = vadd.f32 %v573_v23, %v547_v28 }
 0xe42   :  { %598 = vrot.lane.b32.xlu0 %v596_v24, %s872_s12  ;;  %v779_v18 = vmul.f32 -1.442695, %v576_v29 }
 0xe44   :  { %832 = vpow2.f32 %v779_v18 }
 0xe47   :  { %v730_v26 = vpop.f32.mrf.mxu3 }
 0xe48   :  { %v731_v27 = vadd.f32 %v1111_v25, %v730_v26 }
 0xe4a   :  { %736 = vst [vmem:[#allocation4] sm:$0xff] %v731_v27  ;;  %v833_v30 = vpop.eup %832 }
 0xe4b   :  { %v580_v31 = vadd.f32 1.0, %v833_v30 }
 0xe4d   :  { %834 = vrcp.f32 %v580_v31  ;;  %v592_v37 = vand.u32 2147483648, %v580_v31  ;;  %vm586_vm3 = vweird.f32 %v580_v31  ;;  %v590_v38 = vand.u32 2147483647, %v580_v31 }
 0xe4f   :  { %v593_v40 = vor.u32 1.1754944e-38, %v592_v37  ;;  %vm591_vm5 = vcmp.eq.f32.partialorder %v590_v38, 8.507059e+37 }
 0xe53   :  { %v835_v32 = vpop.eup %834 }
 0xe54   :  { %v582_v33 = vmul.f32 %v835_v32, %v580_v31  ;;  %vm587_vm2 = vweird.f32 %v835_v32 }
 0xe55   :  { %vm588_vm4 = vmor %vm586_vm3, %vm587_vm2 }
 0xe56   :  { %v583_v34 = vsub.f32 1.0, %v582_v33 }
 0xe58   :  { %v584_v35 = vmul.f32 %v835_v32, %v583_v34 }
 0xe5a   :  { %v585_v36 = vadd.f32 %v835_v32, %v584_v35 }
 0xe5c   :  { %v589_v39 = vsel %vm588_vm4, %v835_v32, %v585_v36 }
 0xe5d   :  { %v594_v42 = vsel %vm591_vm5, %v593_v40, %v589_v39 }
 0xe5e   :  { %v608_v49 = vsub.f32 1.0, %v594_v42  ;;  %v614_v52 = vmul.f32 %v594_v42, %v541_v15 }
 0xeb4   :  { %v599_v41 = vpop.permute.xlu0 %598 }
 0xeb5   :  { %v601_v22 = vmul.f32 %v599_v41, %v594_v42 }
 0xeb7   :  { %603 = vrot.lane.b32.xlu1 %v601_v22, %s870_s4 }
 0xf29   :  { %v604_v43 = vpop.permute.xlu1 %603 }
 0xf2a   :  { %v606_v44 = vadd.f32 %v604_v43, %v547_v28 }
 0xf2c   :  { %836 = vtanh.f32 %v606_v44 }
 0xf32   :  { %v837_v47 = vpop.eup %836 }
 0xf33   :  { %610 = vrot.lane.b32.xlu2 %v837_v47, %s871_s27 }
 0xf8d   :  { %v611_v50 = vpop.permute.xlu2 %610 }
 0xf8e   :  { %v613_v53 = vmul.f32 %v611_v50, %v608_v49 }
 0xf90   :  { %v615_v54 = vadd.f32 %v614_v52, %v613_v53 }
 0xf92   :  { %617 = vrot.lane.b32.xlu0 %v615_v54, %s871_s27 }
0x1004   :  { %v618_v55 = vpop.permute.xlu0 %617 }
0x1005   :  { %620 = vst.msk [vmem:[#allocation3 + $0xc] sm:$0x3] %vm170_vm9, %v618_v55  ;;  %781 = vmatmul.msk.f32.vlgmr.msrb.gmra.mxu2 %vm176_vm10, %v618_v55 }
0x1088   :  { %v647_v56 = vpop.f32.mrf.mxu2 }
0x1089   :  { %v670_v57 = vadd.f32 %v647_v56, %v1020_v51  ;;  %v650_v58 = vadd.f32 %v647_v56, %v621_v45 }
0x108b   :  { %672 = vrot.lane.b32.xlu1 %v670_v57, %s872_s12  ;;  %v782_v46 = vmul.f32 -1.442695, %v650_v58 }
0x108d   :  { %838 = vpow2.f32 %v782_v46 }
0x1093   :  { %v839_v59 = vpop.eup %838 }
0x1094   :  { %v654_v60 = vadd.f32 1.0, %v839_v59 }
0x1096   :  { %840 = vrcp.f32 %v654_v60  ;;  %v666_v2 = vand.u32 2147483648, %v654_v60  ;;  %vm660_vm6 = vweird.f32 %v654_v60  ;;  %v664_v3 = vand.u32 2147483647, %v654_v60 }
0x1098   :  { %v667_v4 = vor.u32 1.1754944e-38, %v666_v2  ;;  %vm665_vm11 = vcmp.eq.f32.partialorder %v664_v3, 8.507059e+37 }
0x109c   :  { %v841_v61 = vpop.eup %840 }
0x109d   :  { %v656_v62 = vmul.f32 %v841_v61, %v654_v60  ;;  %vm661_vm8 = vweird.f32 %v841_v61 }
0x109e   :  { %vm662_vm7 = vmor %vm660_vm6, %vm661_vm8 }
0x109f   :  { %v657_v63 = vsub.f32 1.0, %v656_v62 }
0x10a1   :  { %v658_v0 = vmul.f32 %v841_v61, %v657_v63 }
0x10a3   :  { %v659_v1 = vadd.f32 %v841_v61, %v658_v0 }
0x10a5   :  { %v663_v51 = vsel %vm662_vm7, %v841_v61, %v659_v1 }
0x10a6   :  { %v668_v6 = vsel %vm665_vm11, %v667_v4, %v663_v51 }
0x10a7   :  { %v682_v11 = vsub.f32 1.0, %v668_v6  ;;  %v688_v13 = vmul.f32 %v668_v6, %v615_v54 }
0x10fd   :  { %v673_v5 = vpop.permute.xlu1 %672 }
0x10fe   :  { %v675_v7 = vmul.f32 %v673_v5, %v668_v6 }
0x1100   :  { %677 = vrot.lane.b32.xlu2 %v675_v7, %s870_s4  ;;  %s742_s4 = sshll.u32 %s873_s5, 4  ;;  %s743_s4 = int_to_ptr.vmem [resolvable:$true] %s742_s4 }
0x115a   :  { %v678_v8 = vpop.permute.xlu2 %677 }
0x115b   :  { %v680_v9 = vadd.f32 %v678_v8, %v621_v45 }
0x115d   :  { %842 = vtanh.f32 %v680_v9 }
0x1163   :  { %v843_v10 = vpop.eup %842 }
0x1164   :  { %684 = vrot.lane.b32.xlu0 %v843_v10, %s871_s27 }
0x11d6   :  { %v685_v12 = vpop.permute.xlu0 %684 }
0x11d7   :  { %v687_v14 = vmul.f32 %v685_v12, %v682_v11 }
0x11d9   :  { %v689_v15 = vadd.f32 %v688_v13, %v687_v14 }
0x11db   :  { %691 = vrot.lane.b32.xlu1 %v689_v15, %s871_s27  ;;  %s875_s27 = smov 8  }
0x124d   :  { %v692_v16 = vpop.permute.xlu1 %691 }
0x124e   :  { %694 = vst.msk [vmem:[#allocation3 + $0xe] sm:$0x3] %vm170_vm9, %v692_v16 }
0x1255   :  { %v696_v17 = vld [vmem:[#allocation3 + $0x8] sm:$0xff] }
0x1256   :  { %785 = vmatmul.msk.f32.gmra.mxu3 %vm176_vm10, %v696_v17 }
0x12d9   :  { %v733_v19 = vpop.f32.mrf.mxu3 }
0x12da   :  { %v734_v20 = vadd.f32 %v1111_v25, %v733_v19 }
0x12dc   :  { %737 = vst [vmem:[#allocation4 + $0x8] sm:$0xff] %v734_v20 }
0x12dd   :  { %750 = dma.vmem_to_hbm [thread:$0]  %s743_s4, 256, %s745_s10, [#allocation5], %s874_s11, %s874_s11, %s875_s27  }
0x12de   :  { %868 = dma.done.wait [#allocation5], 256  }
0x12df   :  { %869 = vsyncadd [#allocation5], 4294967040 }
0x12e0   :  { %755 = vsyncpa [#allocation5], 1 }

</bundles_post_ra>
